<compile_context>
chip_gen: v6e
topology: v6e:2x2x1
jax: 0.10.0
libtpu: 0.0.40
codegen_flags: <defaults>
</compile_context>

<pallas_src>
import functools
import math

import jax
import jax.numpy as jnp
import numpy as np
from jax.experimental import pallas as pl
from jax.experimental.pallas import tpu as pltpu


def _attention_kernel(x_ref, kb_ref, wqkv_ref, bqkv_ref, wo_ref, bo_ref, o_ref,
                      *, heads):
    # x_ref:    (S, D)     one batch's tokens, bf16 (compute dtype)
    # kb_ref:   (1, S)     additive key-mask bias for this batch, f32
    # wqkv_ref: (D, 3*D)   pre-transposed fused [Q|K|V] weights, bf16
    # bqkv_ref: (1, 3*D)   fused QKV biases, f32
    # wo_ref:   (D, D)     pre-transposed output-projection weights, bf16
    # bo_ref:   (1, D)     f32
    # o_ref:    (S, D)     f32 output
    S, D = x_ref.shape
    dk = D // heads
    cdt = x_ref.dtype  # bf16 MXU-operand dtype

    x = x_ref[...]

    # Fused QKV projection: one (S,D)x(D,3D) MXU contraction, f32 accumulation.
    qkv = jnp.dot(x, wqkv_ref[...],
                  preferred_element_type=jnp.float32) + bqkv_ref[...]   # (S, 3D) f32

    key_bias = kb_ref[...]                                              # (1, S) f32

    ctx_heads = []
    for h in range(heads):           # static unroll; H small, slices are static
        lo = h * dk
        qh = qkv[:, lo:lo + dk].astype(cdt)            # (S, dk); 1/sqrt(dk) folded in
        kh = qkv[:, D + lo:D + lo + dk].astype(cdt)
        vh = qkv[:, 2 * D + lo:2 * D + lo + dk].astype(cdt)

        # Scores for this head/batch only: (S, S), padded keys get -10000.
        s = jnp.einsum('qd,kd->qk', qh, kh,
                       preferred_element_type=jnp.float32) + key_bias

        # Softmax in f32: exp on the EUP, approximate reciprocal instead of divide.
        m = jnp.max(s, axis=-1, keepdims=True)
        e = jnp.exp(s - m)
        p = e * pl.reciprocal(jnp.sum(e, axis=-1, keepdims=True), approx=True)
        # TODO(synk): nn.Dropout(0.1) is identity in eval mode; training-mode
        # stochastic dropout is not implemented here.

        ctx_heads.append(jnp.dot(p.astype(cdt), vh,
                                 preferred_element_type=jnp.float32))   # (S, dk)

    # Assemble heads into a lane-contiguous (S, D) slab == concat(heads), then a
    # single output-projection matmul with K = D.
    concat = jnp.concatenate(ctx_heads, axis=-1)                        # (S, D) f32
    out = jnp.dot(concat.astype(cdt), wo_ref[...],
                  preferred_element_type=jnp.float32) + bo_ref[...]     # (S, D) f32
    # TODO(synk): D=32 (<128 lanes) so the store is a masked vst; a lane-dense
    # relayout would cost more than it saves at this size.
    o_ref[...] = out.astype(o_ref.dtype)


def pack_attention_params(params, heads, compute_dtype=jnp.bfloat16):
    """One-time prep: pre-transpose, fuse QKV, fold in 1/sqrt(dk), cast MXU weights."""
    wq, bq, wk, bk, wv, bv, wo, bo = params
    D = wq.shape[0]
    dk = D // heads
    scale = 1.0 / math.sqrt(dk)
    # nn.Linear computes x @ W.T + b, so store the transposed weights directly.
    wqkv_t = jnp.concatenate([(wq * scale).T, wk.T, wv.T],
                             axis=1).astype(compute_dtype)              # (D, 3D)
    bqkv = jnp.concatenate([bq * scale, bk, bv],
                           axis=-1).astype(jnp.float32)                 # (1, 3D)
    wo_t = wo.T.astype(compute_dtype)                                   # (D, D)
    bo_f = bo.astype(jnp.float32)                                       # (1, D)
    return wqkv_t, bqkv, wo_t, bo_f


def attention_pallas(x, mask, packed_params, heads):
    B, S, D = x.shape
    wqkv_t, bqkv, wo_t, bo = packed_params
    compute_dtype = wqkv_t.dtype

    # Additive key-mask bias, O(B*S): -10000 * (1 - mask), matching the reference.
    if mask is None:
        key_bias = jnp.zeros((B, 1, S), dtype=jnp.float32)
    else:
        key_bias = (-10000.0 * (1.0 - mask.astype(jnp.float32))).reshape(B, 1, S)

    x_c = x.astype(compute_dtype)

    kernel = functools.partial(_attention_kernel, heads=heads)
    out = pl.pallas_call(
        kernel,
        out_shape=jax.ShapeDtypeStruct((B, S, D), jnp.float32),
        grid=(B,),
        in_specs=[
            pl.BlockSpec((None, S, D), lambda b: (b, 0, 0)),     # x (per-batch)
            pl.BlockSpec((None, 1, S), lambda b: (b, 0, 0)),     # key bias (per-batch)
            pl.BlockSpec((D, 3 * D), lambda b: (0, 0)),          # fused QKV weights
            pl.BlockSpec((1, 3 * D), lambda b: (0, 0)),          # fused QKV bias
            pl.BlockSpec((D, D), lambda b: (0, 0)),              # output-proj weights
            pl.BlockSpec((1, D), lambda b: (0, 0)),              # output-proj bias
        ],
        out_specs=pl.BlockSpec((None, S, D), lambda b: (b, 0, 0)),
        compiler_params=pltpu.CompilerParams(
            dimension_semantics=("parallel",)),
    )(x_c, key_bias, wqkv_t, bqkv, wo_t, bo)
    return out.astype(x.dtype)


def attention_reference(x, mask, params, heads):
    """Plain-JAX replica of the PyTorch forward (eval mode) for verification."""
    B, S, D = x.shape
    dk = D // heads
    wq, bq, wk, bk, wv, bv, wo, bo = params
    q = (x @ wq.T + bq[0]).reshape(B, S, heads, dk).transpose(0, 2, 1, 3)
    k = (x @ wk.T + bk[0]).reshape(B, S, heads, dk).transpose(0, 2, 1, 3)
    v = (x @ wv.T + bv[0]).reshape(B, S, heads, dk).transpose(0, 2, 1, 3)
    scores = jnp.einsum('bhqd,bhkd->bhqk', q, k) / math.sqrt(dk)
    if mask is not None:
        m = mask[:, :, None, :]                   # (B,1,1,S)
        scores = scores - 10000.0 * (1.0 - m)
    probs = jax.nn.softmax(scores, axis=-1)
    out = jnp.einsum('bhqk,bhkd->bhqd', probs, v)
    concat = out.transpose(0, 2, 1, 3).reshape(B, S, D)
    return concat @ wo.T + bo[0]


if __name__ == "__main__":
    # Small shapes consistent with the module: dim=32, heads=4, seq/max_len=8
    B, S, D, H = 2, 8, 32, 4

    key = jax.random.PRNGKey(0)
    keys = jax.random.split(key, 10)

    x = jax.random.normal(keys[0], (B, S, D), dtype=jnp.float32)

    # mask: last two keys of batch 1 masked out, everything else visible
    mask = jnp.ones((B, 1, S), dtype=jnp.float32)
    mask = mask.at[1, 0, -2:].set(0.0)

    scale = 1.0 / math.sqrt(D)
    wq = jax.random.uniform(keys[1], (D, D), jnp.float32, -scale, scale)
    wk = jax.random.uniform(keys[2], (D, D), jnp.float32, -scale, scale)
    wv = jax.random.uniform(keys[3], (D, D), jnp.float32, -scale, scale)
    wo = jax.random.uniform(keys[4], (D, D), jnp.float32, -scale, scale)
    bq = jax.random.uniform(keys[5], (1, D), jnp.float32, -scale, scale)
    bk = jax.random.uniform(keys[6], (1, D), jnp.float32, -scale, scale)
    bv = jax.random.uniform(keys[7], (1, D), jnp.float32, -scale, scale)
    bo = jax.random.uniform(keys[8], (1, D), jnp.float32, -scale, scale)
    params = (wq, bq, wk, bk, wv, bv, wo, bo)

    packed = pack_attention_params(params, H)

    out = attention_pallas(x, mask, packed, H)
    jax.block_until_ready(out)

    ref = attention_reference(x, mask, params, H)
    # Tolerance loosened for bf16 MXU operands (f32 accumulation) and for
    # pl.reciprocal(approx=True) in the softmax.
    np.testing.assert_allclose(np.asarray(out), np.asarray(ref),
                               rtol=2e-2, atol=2e-2)

    print("KERNEL_OK")
</pallas_src>

<mosaic_0001>
module attributes {stable_mosaic.version = 11 : i64} {
  func.func @_attention_kernel(%arg0: i32, %arg1: memref<1x8x32xbf16, #tpu.memory_space<vmem>>, %arg2: memref<1x1x8xf32, #tpu.memory_space<vmem>>, %arg3: memref<32x96xbf16, #tpu.memory_space<vmem>>, %arg4: memref<1x96xf32, #tpu.memory_space<vmem>>, %arg5: memref<32x32xbf16, #tpu.memory_space<vmem>>, %arg6: memref<1x32xf32, #tpu.memory_space<vmem>>, %arg7: memref<1x8x32xf32, #tpu.memory_space<vmem>>) attributes {dimension_semantics = [#tpu.dimension_semantics<parallel>], iteration_bounds = array<i64: 2>, scalar_prefetch = 0 : i64, scratch_operands = 0 : i64, tpu.core_type = #tpu.core_type<tc>, window_params = [{transform_indices = @transform_0, window_bounds = array<i64: 1, 8, 32>}, {transform_indices = @transform_1, window_bounds = array<i64: 1, 1, 8>}, {pipeline_mode = #tpu.pipeline_mode<synchronous>, transform_indices = @transform_2, window_bounds = array<i64: 32, 96>}, {pipeline_mode = #tpu.pipeline_mode<synchronous>, transform_indices = @transform_3, window_bounds = array<i64: 1, 96>}, {pipeline_mode = #tpu.pipeline_mode<synchronous>, transform_indices = @transform_4, window_bounds = array<i64: 32, 32>}, {pipeline_mode = #tpu.pipeline_mode<synchronous>, transform_indices = @transform_5, window_bounds = array<i64: 1, 32>}, {transform_indices = @transform_6, window_bounds = array<i64: 1, 8, 32>}]} {
    %c0 = arith.constant 0 : index
    %c0_0 = arith.constant 0 : index
    %c0_1 = arith.constant 0 : index
    %0 = vector.load %arg1[%c0, %c0_0, %c0_1] : memref<1x8x32xbf16, #tpu.memory_space<vmem>>, vector<1x8x32xbf16>
    %1 = vector.shape_cast %0 : vector<1x8x32xbf16> to vector<8x32xbf16>
    %c0_2 = arith.constant 0 : index
    %c0_3 = arith.constant 0 : index
    %2 = vector.load %arg3[%c0_2, %c0_3] : memref<32x96xbf16, #tpu.memory_space<vmem>>, vector<32x96xbf16>
    %cst = arith.constant dense<0.000000e+00> : vector<8x96xf32>
    %3 = tpu.matmul %1, %2, %cst {dimension_numbers = #tpu.dot_dimension_numbers<[1], [0], [0], [1], [0, 0, 1, 1], [], []>} : vector<8x32xbf16>, vector<32x96xbf16>, vector<8x96xf32> -> vector<8x96xf32>
    %c0_4 = arith.constant 0 : index
    %c0_5 = arith.constant 0 : index
    %4 = vector.load %arg4[%c0_4, %c0_5] : memref<1x96xf32, #tpu.memory_space<vmem>>, vector<1x96xf32>
    %5 = vector.broadcast %4 : vector<1x96xf32> to vector<8x96xf32>
    %6 = arith.addf %3, %5 : vector<8x96xf32>
    %c0_6 = arith.constant 0 : index
    %c0_7 = arith.constant 0 : index
    %c0_8 = arith.constant 0 : index
    %7 = vector.load %arg2[%c0_6, %c0_7, %c0_8] : memref<1x1x8xf32, #tpu.memory_space<vmem>>, vector<1x1x8xf32>
    %8 = vector.shape_cast %7 : vector<1x1x8xf32> to vector<1x8xf32>
    %9 = vector.extract_strided_slice %6 {offsets = [0, 0], sizes = [8, 8], strides = [1, 1]} : vector<8x96xf32> to vector<8x8xf32>
    %10 = arith.truncf %9 : vector<8x8xf32> to vector<8x8xbf16>
    %11 = vector.extract_strided_slice %6 {offsets = [0, 32], sizes = [8, 8], strides = [1, 1]} : vector<8x96xf32> to vector<8x8xf32>
    %12 = arith.truncf %11 : vector<8x8xf32> to vector<8x8xbf16>
    %13 = vector.extract_strided_slice %6 {offsets = [0, 64], sizes = [8, 8], strides = [1, 1]} : vector<8x96xf32> to vector<8x8xf32>
    %14 = arith.truncf %13 : vector<8x8xf32> to vector<8x8xbf16>
    "tpu.trace_start"() <{level = 10 : i32, message = "qd,kd->qk"}> : () -> ()
    %cst_9 = arith.constant dense<0.000000e+00> : vector<8x8xf32>
    %15 = tpu.matmul %10, %12, %cst_9 {dimension_numbers = #tpu.dot_dimension_numbers<[1], [1], [0], [0], [0, 0, 1, 0], [], []>} : vector<8x8xbf16>, vector<8x8xbf16>, vector<8x8xf32> -> vector<8x8xf32>
    "tpu.trace_stop"() : () -> ()
    %16 = vector.broadcast %8 : vector<1x8xf32> to vector<8x8xf32>
    %17 = arith.addf %15, %16 : vector<8x8xf32>
    %cst_10 = arith.constant dense<0xFF800000> : vector<8xf32>
    %18 = vector.multi_reduction <maximumf>, %17, %cst_10 [1] : vector<8x8xf32> to vector<8xf32>
    %19 = vector.shape_cast %18 : vector<8xf32> to vector<8x1xf32>
    %20 = vector.broadcast %19 : vector<8x1xf32> to vector<8x8xf32>
    %21 = arith.subf %17, %20 : vector<8x8xf32>
    %22 = math.exp %21 : vector<8x8xf32>
    %cst_11 = arith.constant dense<0.000000e+00> : vector<8xf32>
    %23 = vector.multi_reduction <add>, %22, %cst_11 [1] : vector<8x8xf32> to vector<8xf32>
    %24 = vector.shape_cast %23 : vector<8xf32> to vector<8x1xf32>
    %25 = tpu.reciprocal %24 {approx = true} : vector<8x1xf32> -> vector<8x1xf32>
    %26 = vector.broadcast %25 : vector<8x1xf32> to vector<8x8xf32>
    %27 = arith.mulf %22, %26 : vector<8x8xf32>
    %28 = arith.truncf %27 : vector<8x8xf32> to vector<8x8xbf16>
    %cst_12 = arith.constant dense<0.000000e+00> : vector<8x8xf32>
    %29 = tpu.matmul %28, %14, %cst_12 {dimension_numbers = #tpu.dot_dimension_numbers<[1], [0], [0], [1], [0, 0, 1, 1], [], []>} : vector<8x8xbf16>, vector<8x8xbf16>, vector<8x8xf32> -> vector<8x8xf32>
    %30 = vector.extract_strided_slice %6 {offsets = [0, 8], sizes = [8, 8], strides = [1, 1]} : vector<8x96xf32> to vector<8x8xf32>
    %31 = arith.truncf %30 : vector<8x8xf32> to vector<8x8xbf16>
    %32 = vector.extract_strided_slice %6 {offsets = [0, 40], sizes = [8, 8], strides = [1, 1]} : vector<8x96xf32> to vector<8x8xf32>
    %33 = arith.truncf %32 : vector<8x8xf32> to vector<8x8xbf16>
    %34 = vector.extract_strided_slice %6 {offsets = [0, 72], sizes = [8, 8], strides = [1, 1]} : vector<8x96xf32> to vector<8x8xf32>
    %35 = arith.truncf %34 : vector<8x8xf32> to vector<8x8xbf16>
    "tpu.trace_start"() <{level = 10 : i32, message = "qd,kd->qk"}> : () -> ()
    %cst_13 = arith.constant dense<0.000000e+00> : vector<8x8xf32>
    %36 = tpu.matmul %31, %33, %cst_13 {dimension_numbers = #tpu.dot_dimension_numbers<[1], [1], [0], [0], [0, 0, 1, 0], [], []>} : vector<8x8xbf16>, vector<8x8xbf16>, vector<8x8xf32> -> vector<8x8xf32>
    "tpu.trace_stop"() : () -> ()
    %37 = vector.broadcast %8 : vector<1x8xf32> to vector<8x8xf32>
    %38 = arith.addf %36, %37 : vector<8x8xf32>
    %cst_14 = arith.constant dense<0xFF800000> : vector<8xf32>
    %39 = vector.multi_reduction <maximumf>, %38, %cst_14 [1] : vector<8x8xf32> to vector<8xf32>
    %40 = vector.shape_cast %39 : vector<8xf32> to vector<8x1xf32>
    %41 = vector.broadcast %40 : vector<8x1xf32> to vector<8x8xf32>
    %42 = arith.subf %38, %41 : vector<8x8xf32>
    %43 = math.exp %42 : vector<8x8xf32>
    %cst_15 = arith.constant dense<0.000000e+00> : vector<8xf32>
    %44 = vector.multi_reduction <add>, %43, %cst_15 [1] : vector<8x8xf32> to vector<8xf32>
    %45 = vector.shape_cast %44 : vector<8xf32> to vector<8x1xf32>
    %46 = tpu.reciprocal %45 {approx = true} : vector<8x1xf32> -> vector<8x1xf32>
    %47 = vector.broadcast %46 : vector<8x1xf32> to vector<8x8xf32>
    %48 = arith.mulf %43, %47 : vector<8x8xf32>
    %49 = arith.truncf %48 : vector<8x8xf32> to vector<8x8xbf16>
    %cst_16 = arith.constant dense<0.000000e+00> : vector<8x8xf32>
    %50 = tpu.matmul %49, %35, %cst_16 {dimension_numbers = #tpu.dot_dimension_numbers<[1], [0], [0], [1], [0, 0, 1, 1], [], []>} : vector<8x8xbf16>, vector<8x8xbf16>, vector<8x8xf32> -> vector<8x8xf32>
    %51 = vector.extract_strided_slice %6 {offsets = [0, 16], sizes = [8, 8], strides = [1, 1]} : vector<8x96xf32> to vector<8x8xf32>
    %52 = arith.truncf %51 : vector<8x8xf32> to vector<8x8xbf16>
    %53 = vector.extract_strided_slice %6 {offsets = [0, 48], sizes = [8, 8], strides = [1, 1]} : vector<8x96xf32> to vector<8x8xf32>
    %54 = arith.truncf %53 : vector<8x8xf32> to vector<8x8xbf16>
    %55 = vector.extract_strided_slice %6 {offsets = [0, 80], sizes = [8, 8], strides = [1, 1]} : vector<8x96xf32> to vector<8x8xf32>
    %56 = arith.truncf %55 : vector<8x8xf32> to vector<8x8xbf16>
    "tpu.trace_start"() <{level = 10 : i32, message = "qd,kd->qk"}> : () -> ()
    %cst_17 = arith.constant dense<0.000000e+00> : vector<8x8xf32>
    %57 = tpu.matmul %52, %54, %cst_17 {dimension_numbers = #tpu.dot_dimension_numbers<[1], [1], [0], [0], [0, 0, 1, 0], [], []>} : vector<8x8xbf16>, vector<8x8xbf16>, vector<8x8xf32> -> vector<8x8xf32>
    "tpu.trace_stop"() : () -> ()
    %58 = vector.broadcast %8 : vector<1x8xf32> to vector<8x8xf32>
    %59 = arith.addf %57, %58 : vector<8x8xf32>
    %cst_18 = arith.constant dense<0xFF800000> : vector<8xf32>
    %60 = vector.multi_reduction <maximumf>, %59, %cst_18 [1] : vector<8x8xf32> to vector<8xf32>
    %61 = vector.shape_cast %60 : vector<8xf32> to vector<8x1xf32>
    %62 = vector.broadcast %61 : vector<8x1xf32> to vector<8x8xf32>
    %63 = arith.subf %59, %62 : vector<8x8xf32>
    %64 = math.exp %63 : vector<8x8xf32>
    %cst_19 = arith.constant dense<0.000000e+00> : vector<8xf32>
    %65 = vector.multi_reduction <add>, %64, %cst_19 [1] : vector<8x8xf32> to vector<8xf32>
    %66 = vector.shape_cast %65 : vector<8xf32> to vector<8x1xf32>
    %67 = tpu.reciprocal %66 {approx = true} : vector<8x1xf32> -> vector<8x1xf32>
    %68 = vector.broadcast %67 : vector<8x1xf32> to vector<8x8xf32>
    %69 = arith.mulf %64, %68 : vector<8x8xf32>
    %70 = arith.truncf %69 : vector<8x8xf32> to vector<8x8xbf16>
    %cst_20 = arith.constant dense<0.000000e+00> : vector<8x8xf32>
    %71 = tpu.matmul %70, %56, %cst_20 {dimension_numbers = #tpu.dot_dimension_numbers<[1], [0], [0], [1], [0, 0, 1, 1], [], []>} : vector<8x8xbf16>, vector<8x8xbf16>, vector<8x8xf32> -> vector<8x8xf32>
    %72 = vector.extract_strided_slice %6 {offsets = [0, 24], sizes = [8, 8], strides = [1, 1]} : vector<8x96xf32> to vector<8x8xf32>
    %73 = arith.truncf %72 : vector<8x8xf32> to vector<8x8xbf16>
    %74 = vector.extract_strided_slice %6 {offsets = [0, 56], sizes = [8, 8], strides = [1, 1]} : vector<8x96xf32> to vector<8x8xf32>
    %75 = arith.truncf %74 : vector<8x8xf32> to vector<8x8xbf16>
    %76 = vector.extract_strided_slice %6 {offsets = [0, 88], sizes = [8, 8], strides = [1, 1]} : vector<8x96xf32> to vector<8x8xf32>
    %77 = arith.truncf %76 : vector<8x8xf32> to vector<8x8xbf16>
    "tpu.trace_start"() <{level = 10 : i32, message = "qd,kd->qk"}> : () -> ()
    %cst_21 = arith.constant dense<0.000000e+00> : vector<8x8xf32>
    %78 = tpu.matmul %73, %75, %cst_21 {dimension_numbers = #tpu.dot_dimension_numbers<[1], [1], [0], [0], [0, 0, 1, 0], [], []>} : vector<8x8xbf16>, vector<8x8xbf16>, vector<8x8xf32> -> vector<8x8xf32>
    "tpu.trace_stop"() : () -> ()
    %79 = vector.broadcast %8 : vector<1x8xf32> to vector<8x8xf32>
    %80 = arith.addf %78, %79 : vector<8x8xf32>
    %cst_22 = arith.constant dense<0xFF800000> : vector<8xf32>
    %81 = vector.multi_reduction <maximumf>, %80, %cst_22 [1] : vector<8x8xf32> to vector<8xf32>
    %82 = vector.shape_cast %81 : vector<8xf32> to vector<8x1xf32>
    %83 = vector.broadcast %82 : vector<8x1xf32> to vector<8x8xf32>
    %84 = arith.subf %80, %83 : vector<8x8xf32>
    %85 = math.exp %84 : vector<8x8xf32>
    %cst_23 = arith.constant dense<0.000000e+00> : vector<8xf32>
    %86 = vector.multi_reduction <add>, %85, %cst_23 [1] : vector<8x8xf32> to vector<8xf32>
    %87 = vector.shape_cast %86 : vector<8xf32> to vector<8x1xf32>
    %88 = tpu.reciprocal %87 {approx = true} : vector<8x1xf32> -> vector<8x1xf32>
    %89 = vector.broadcast %88 : vector<8x1xf32> to vector<8x8xf32>
    %90 = arith.mulf %85, %89 : vector<8x8xf32>
    %91 = arith.truncf %90 : vector<8x8xf32> to vector<8x8xbf16>
    %cst_24 = arith.constant dense<0.000000e+00> : vector<8x8xf32>
    %92 = tpu.matmul %91, %77, %cst_24 {dimension_numbers = #tpu.dot_dimension_numbers<[1], [0], [0], [1], [0, 0, 1, 1], [], []>} : vector<8x8xbf16>, vector<8x8xbf16>, vector<8x8xf32> -> vector<8x8xf32>
    %93 = tpu.concatenate %29, %50, %71, %92 in 1 : vector<8x8xf32>, vector<8x8xf32>, vector<8x8xf32>, vector<8x8xf32> -> vector<8x32xf32>
    %94 = arith.truncf %93 : vector<8x32xf32> to vector<8x32xbf16>
    %c0_25 = arith.constant 0 : index
    %c0_26 = arith.constant 0 : index
    %95 = vector.load %arg5[%c0_25, %c0_26] : memref<32x32xbf16, #tpu.memory_space<vmem>>, vector<32x32xbf16>
    %cst_27 = arith.constant dense<0.000000e+00> : vector<8x32xf32>
    %96 = tpu.matmul %94, %95, %cst_27 {dimension_numbers = #tpu.dot_dimension_numbers<[1], [0], [0], [1], [0, 0, 1, 1], [], []>} : vector<8x32xbf16>, vector<32x32xbf16>, vector<8x32xf32> -> vector<8x32xf32>
    %c0_28 = arith.constant 0 : index
    %c0_29 = arith.constant 0 : index
    %97 = vector.load %arg6[%c0_28, %c0_29] : memref<1x32xf32, #tpu.memory_space<vmem>>, vector<1x32xf32>
    %98 = vector.broadcast %97 : vector<1x32xf32> to vector<8x32xf32>
    %99 = arith.addf %96, %98 : vector<8x32xf32>
    %c0_30 = arith.constant 0 : index
    %c0_31 = arith.constant 0 : index
    %c0_32 = arith.constant 0 : index
    %100 = vector.load %arg7[%c0_30, %c0_31, %c0_32] : memref<1x8x32xf32, #tpu.memory_space<vmem>>, vector<1x8x32xf32>
    %101 = vector.shape_cast %100 : vector<1x8x32xf32> to vector<8x32xf32>
    %102 = vector.shape_cast %99 : vector<8x32xf32> to vector<1x8x32xf32>
    tpu.vector_store %arg7[%c0_30, %c0_31, %c0_32], %102 {strides = array<i32>} : memref<1x8x32xf32, #tpu.memory_space<vmem>>, vector<1x8x32xf32>,
    return
  }
  func.func @transform_0(%arg0: i32) -> (i32, i32, i32) {
    %c0_i32 = arith.constant 0 : i32
    %c0_i32_0 = arith.constant 0 : i32
    %c0_i32_1 = arith.constant 0 : i32
    return %arg0, %c0_i32, %c0_i32_0 : i32, i32, i32
  }
  func.func @transform_1(%arg0: i32) -> (i32, i32, i32) {
    %c0_i32 = arith.constant 0 : i32
    %c0_i32_0 = arith.constant 0 : i32
    %c0_i32_1 = arith.constant 0 : i32
    return %arg0, %c0_i32, %c0_i32_0 : i32, i32, i32
  }
  func.func @transform_2(%arg0: i32) -> (i32, i32) {
    %c0_i32 = arith.constant 0 : i32
    %c0_i32_0 = arith.constant 0 : i32
    %c0_i32_1 = arith.constant 0 : i32
    return %c0_i32, %c0_i32_0 : i32, i32
  }
  func.func @transform_3(%arg0: i32) -> (i32, i32) {
    %c0_i32 = arith.constant 0 : i32
    %c0_i32_0 = arith.constant 0 : i32
    %c0_i32_1 = arith.constant 0 : i32
    return %c0_i32, %c0_i32_0 : i32, i32
  }
  func.func @transform_4(%arg0: i32) -> (i32, i32) {
    %c0_i32 = arith.constant 0 : i32
    %c0_i32_0 = arith.constant 0 : i32
    %c0_i32_1 = arith.constant 0 : i32
    return %c0_i32, %c0_i32_0 : i32, i32
  }
  func.func @transform_5(%arg0: i32) -> (i32, i32) {
    %c0_i32 = arith.constant 0 : i32
    %c0_i32_0 = arith.constant 0 : i32
    %c0_i32_1 = arith.constant 0 : i32
    return %c0_i32, %c0_i32_0 : i32, i32
  }
  func.func @transform_6(%arg0: i32) -> (i32, i32, i32) {
    %c0_i32 = arith.constant 0 : i32
    %c0_i32_0 = arith.constant 0 : i32
    %c0_i32_1 = arith.constant 0 : i32
    return %arg0, %c0_i32, %c0_i32_0 : i32, i32, i32
  }
}

</mosaic_0001>

<bundles_post_ra>
// kernel: tpu_custom_call.1
= control target key start
LH: loop header
LB: loop body
LE: loop exit
PB: predicated region body
PF: predicated region fallthrough
CT: control target
= control target key end

     0   :  { %s1838_s0 = inlined_call_operand.hbm [shape: bf16[2,8,32], index: 0, kind: input, shape index: {}]   ;;  %s1839_s1 = inlined_call_operand.hbm [shape: f32[2,1,8], index: 1, kind: input, shape index: {}]   ;;  %s1840_s2 = inlined_call_operand.hbm [shape: bf16[32,96], index: 2, kind: input, shape index: {}]   ;;  %s1841_s3 = inlined_call_operand.vmem [shape: f32[1,96], index: 3, kind: input, shape index: {}]   ;;  %s1842_s4 = inlined_call_operand.hbm [shape: bf16[32,32], index: 4, kind: input, shape index: {}]   ;;  %s1843_s5 = inlined_call_operand.vmem [shape: f32[1,32], index: 5, kind: input, shape index: {}]   ;;  %s1844_s6 = inlined_call_operand.hbm [shape: f32[2,8,32], index: 6, kind: output, shape index: {}]  }
   0x1   :  { %1849 = sst [smem:[#allocation16_spill]] %s1838_s0 }
   0x2   :  { %1850 = sst [smem:[#allocation17_spill]] %s1840_s2 }
   0x3   :  { %1851 = sst [smem:[#allocation18_spill]] %s1842_s4 }
   0x4   :  { %11 = vsyncpa [#allocation3], 0 }
   0x5   :  { %13 = vsyncpa [#allocation3 + $0x1], 0 }
   0x6   :  { %14 = vsyncpa [#allocation6], 0 }
   0x7   :  { %16 = vsyncpa [#allocation6 + $0x1], 0 }
   0x8   :  { %17 = vsyncpa [#allocation9], 0 }
   0x9   :  { %18 = vsyncpa [#allocation4], 0 }
   0xa   :  { %20 = vsyncpa [#allocation4 + $0x1], 0  ;;  %s1530_s21 = smov 0   ;;  %s1532_s22 = smov 0  }
   0xb   :  { %s1534_s23 = smov 0   ;;  %s1536_s24 = smov 0  }
   0xc LB: > { %s1551_s25 = sadd.s32 4294967295, %s1470_s24   ;;  %s1056_s26 = sadd.s32 4294967294, %s1470_s24   ;;  %s1470_s24 = sphi %s1536_s24, %s1875_s24   ;;  %s1466_s23 = sphi %s1534_s23, %s1874_s23   ;;  %s1462_s22 = sphi %s1532_s22, %s1873_s22   ;;  %s1458_s21 = sphi %s1530_s21, %s1872_s21  }
   0xd   : > { %p46_p0 = scmp.ne.s32.totalorder %s1462_s22, %s1458_s21  ;;  %p1845_p1 = scmp.eq.s32.totalorder %s1551_s25, 0 }
   0xe   : > { %p186_p3 = scmp.eq.s32.totalorder %s1056_s26, 1  ;;  %p1057_p5 = scmp.ge.s32.totalorder %s1470_s24, 1 }
   0xf   : > { %p1560_p4 = por %p1845_p1, %p46_p0  ;;  %p193_p7 = scmp.lt.s32.totalorder %s1470_s24, 3 }
  0x10   : > { %p1565_p6 = por %p186_p3, %p46_p0  ;;  %s1472_s30 = smov [#allocation7]  }
  0x11   : > { %s1852_s27 = scalar_select %p1560_p4, 1, 0 }
  0x12   : > { %s1853_s28 = scalar_select %p1565_p6, 1, 0 }
  0x13   : > { %p1570_p8 = pnand %p1057_p5, %p193_p7  ;;  %s205_s7 = sshll.u32 %s1472_s30, 4  ;;  %s206_s7 = int_to_ptr.vmem [resolvable:$true] %s205_s7 }
  0x14   : > { %s1473_s9 = smov [#allocation8]   ;;  %s1297_s11 = scalar_lea.vmem %s206_s7, 256 }
  0x15   : > { %s1854_s29 = scalar_select %p1570_p8, 1, 0 }
  0x16   : > { %p1190_p9 = pneg %p1570_p8  ;;  %s221_s10 = sshll.u32 %s1473_s9, 4  ;;  %s222_s10 = int_to_ptr.vmem [resolvable:$true] %s221_s10 }
  0x17   : > { %p1298_p13 = scmp.ne.s32.totalorder %s206_s7, %s1297_s11  ;;  %p1305_p5 = scmp.lt.s32.totalorder %s206_s7, %s206_s7 }
  0x18   : > { %p1579_p11 = pnand %p1190_p9, %p1845_p1  ;;  %p1306_p7 = scmp.lt.s32.totalorder %s1297_s11, %s1297_s11 }
  0x1a   : > { %p1288_p12 = pneg %p1579_p11  ;;  %p1307_p10 = por %p1306_p7, %p1305_p5 }
  0x1c   : > { %p1300_p0 = pnand %p1298_p13, %p1288_p12 }
  0x1e   : > { %p1301_p3 = pneg %p1300_p0 }
  0x20   : > { %p1308_p9 = pnand %p1307_p10, %p1301_p3 }
  0x22   : > { %1311 = shalt.err (!%p1308_p9)
}
  0x23   : > { %s1474_s12 = smov 64   ;;  %s1475_s13 = smov 4  }
  0x24   : > { %s1856_s2 = sld [smem:[#allocation17_spill]]  ;;  %s1323_s16 = scalar_lea.vmem %s222_s10, 256 }
  0x25   : > { %p1324_p1 = scmp.ne.s32.totalorder %s222_s10, %s1323_s16  ;;  %p1331_p2 = scmp.lt.s32.totalorder %s222_s10, %s222_s10 }
  0x26   : > { %p1332_p6 = scmp.lt.s32.totalorder %s1323_s16, %s1323_s16 }
  0x27   : > { %p1326_p13 = pnand %p1324_p1, %p1288_p12 }
  0x28   : > { %p1333_p5 = por %p1332_p6, %p1331_p2 }
  0x29   : > { %p1327_p0 = pneg %p1326_p13 }
  0x2a   : > { %1193 = dma.hbm_to_vmem [thread:$0]  (!%p1579_p11), %s1856_s2, 256, %s206_s7, [#allocation6], %s1474_s12, %s1474_s12, %s1475_s13  }
  0x2b   : > { %p1334_p10 = pnand %p1333_p5, %p1327_p0 }
  0x2d   : > { %1337 = shalt.err (!%p1334_p10)
}
  0x2e   : > { %s1857_s4 = sld [smem:[#allocation18_spill]]  ;;  %s1602_s19 = sadd.s32 1, %s1470_s24  }
  0x2f   : > { %s33_s20 = sadd.s32 1, %s1466_s23  ;;  %s30_s26 = ssub.s32 %s1470_s24, %s1602_s19 }
  0x30   : > { %p40_p1 = scmp.ne.s32.totalorder %s1466_s23, %s1462_s22  ;;  %p31_p2 = scmp.eq.s32.totalorder %s30_s26, 0 }
  0x31   : > { %p41_p6 = scmp.eq.s32.totalorder %s1470_s24, 0  ;;  %p1858_p12 = scmp.eq.s32.totalorder %s1551_s25, 1 }
  0x32   : > { %p1210_p7 = scmp.lt.s32.totalorder %s1470_s24, 2  ;;  %s1621_s8 = sand.u32 1, %s1466_s23  }
  0x33   : > { %p1612_p3 = por %p1858_p12, %p40_p1  ;;  %p42_p9 = por %p41_p6, %p40_p1 }
  0x34   : > { %1196 = dma.hbm_to_vmem [thread:$0]  (!%p1579_p11), %s1857_s4, 256, %s222_s10, [#allocation9], %s1474_s12, %s1474_s12, %s1475_s13  }
  0x35   : > { %s1859_s30 = scalar_select %p1612_p3, 1, 0 }
  0x36   : > { %s1618_s7 = scalar_select %p31_p2, %s1466_s23, %s33_s20  }
  0x37   : > { %s1061_s9 = sshll.u32 %s1621_s8, 2  ;;  %s1062_s10 = sshll.u32 %s1470_s24, 6 }
  0x38   : > { %s1860_s0 = sld [smem:[#allocation16_spill]]  ;;  %s242_s14 = scalar_lea.vmem [#allocation2], %s1061_s9 }
  0x39   : > { %s249_s15 = sshll.u32 %s242_s14, 4  ;;  %p1632_p11 = pnand %p1210_p7, %p42_p9  ;;  %s1630_s15 = int_to_ptr.vmem [resolvable:$true] %s249_s15 }
  0x3a   : > { %s239_s18 = scalar_lea.sflag [#allocation3], %s1621_s8 }
  0x3b   : > { %p1340_p0 = pneg %p1632_p11 }
  0x3e   : > { %s1628_s13 = scalar_lea.hbm %s1860_s0, %s1062_s10  ;;  %s1343_s10 = scalar_lea.hbm %s1860_s0, 128 }
  0x3f   : > { %s1338_s20 = scalar_lea.hbm %s1628_s13, 64  ;;  %p1344_p1 = scmp.lt.s32.totalorder %s1628_s13, %s1860_s0 }
  0x40   : > { %p1339_p13 = scmp.ne.s32.totalorder %s1628_s13, %s1338_s20  ;;  %p1345_p2 = scmp.lt.s32.totalorder %s1343_s10, %s1338_s20 }
  0x42   : > { %p1341_p5 = pnand %p1340_p0, %p1339_p13  ;;  %p1346_p6 = por %p1345_p2, %p1344_p1 }
  0x44   : > { %p1342_p10 = pneg %p1341_p5 }
  0x46   : > { %p1347_p12 = pnand %p1346_p6, %p1342_p10 }
  0x48   : > { %1350 = shalt.err (!%p1347_p12)
}
  0x49   : > { %s1351_s14 = scalar_lea.vmem %s1630_s15, 64  ;;  %s1476_s26 = smov [#allocation2]  }
  0x4a   : > { %p1352_p7 = scmp.ne.s32.totalorder %s1630_s15, %s1351_s14  ;;  %s1356_s9 = sshll.u32 %s1476_s26, 4  ;;  %s1357_s9 = int_to_ptr.vmem [resolvable:$false] %s1356_s9 }
  0x4b   : > { %s1358_s17 = scalar_lea.vmem %s1357_s9, 128  ;;  %p1359_p5 = scmp.lt.s32.totalorder %s1630_s15, %s1357_s9 }
  0x4c   : > { %p1354_p9 = pnand %p1352_p7, %p1340_p0  ;;  %p1360_p3 = scmp.lt.s32.totalorder %s1358_s17, %s1351_s14 }
  0x4e   : > { %p1355_p13 = pneg %p1354_p9  ;;  %p1361_p4 = por %p1360_p3, %p1359_p5 }
  0x50   : > { %p1362_p1 = pnand %p1361_p4, %p1355_p13 }
  0x52   : > { %1365 = shalt.err (!%p1362_p1)
}
  0x53   : > { %1200 = dma.hbm_to_vmem [thread:$0]  (!%p1632_p11), %s1628_s13, 64, %s1630_s15, %s239_s18  }
  0x54   : > { %s1063_s20 = sshll.u32 %s1470_s24, 4  ;;  %s259_s10 = scalar_lea.vmem [#allocation5], %s1621_s8 }
  0x55   : > { %s266_s11 = sshll.u32 %s259_s10, 4  ;;  %s264_s9 = scalar_lea.hbm %s1839_s1, %s1063_s20  ;;  %s267_s11 = int_to_ptr.vmem [resolvable:$true] %s266_s11 }
  0x56   : > { %s1862_s17 = sand.u32 1, %s1470_s24   ;;  %s1366_s0 = scalar_lea.hbm %s264_s9, 16 }
  0x57   : > { %s257_s14 = scalar_lea.sflag [#allocation6], %s1862_s17  ;;  %p1367_p4 = scmp.ne.s32.totalorder %s264_s9, %s1366_s0 }
  0x58   : > { %s1371_s13 = scalar_lea.hbm %s1839_s1, 32  ;;  %p1372_p2 = scmp.lt.s32.totalorder %s264_s9, %s1839_s1 }
  0x59   : > { %p1369_p3 = pnand %p1367_p4, %p1340_p0  ;;  %p1373_p6 = scmp.lt.s32.totalorder %s1371_s13, %s1366_s0 }
  0x5b   : > { %p1370_p10 = pneg %p1369_p3  ;;  %p1374_p12 = por %p1373_p6, %p1372_p2 }
  0x5d   : > { %p1375_p7 = pnand %p1374_p12, %p1370_p10 }
  0x5f   : > { %1378 = shalt.err (!%p1375_p7)
}
  0x60   : > { %s1379_s18 = scalar_lea.vmem %s267_s11, 16  ;;  %s1477_s20 = smov [#allocation5]  }
  0x61   : > { %p1380_p9 = scmp.ne.s32.totalorder %s267_s11, %s1379_s18  ;;  %s1384_s10 = sshll.u32 %s1477_s20, 4  ;;  %s1385_s10 = int_to_ptr.vmem [resolvable:$false] %s1384_s10 }
  0x62   : > { %s1386_s2 = scalar_lea.vmem %s1385_s10, 32  ;;  %p1387_p1 = scmp.lt.s32.totalorder %s267_s11, %s1385_s10 }
  0x63   : > { %p1382_p13 = pnand %p1380_p9, %p1340_p0  ;;  %p1388_p4 = scmp.lt.s32.totalorder %s1386_s2, %s1379_s18 }
  0x65   : > { %p1383_p5 = pneg %p1382_p13  ;;  %p1389_p3 = por %p1388_p4, %p1387_p1 }
  0x67   : > { %p1390_p8 = pnand %p1389_p3, %p1383_p5 }
  0x69   : > { %1393 = shalt.err (!%p1390_p8)
}
  0x6a   : > { %1203 = dma.hbm_to_vmem [thread:$0]  (!%p1632_p11), %s264_s9, 16, %s267_s11, %s257_s14  }
  0x6b   : > { %p1863_p10 = scmp.ne.s32.totalorder %s1854_s29, 0 }
  0x6c   : > { %s1686_s0 = sand.u32 (!%p1863_p10), 1, %s1462_s22   ;;  %p1864_p0 = scmp.ne.s32.totalorder (!%p1863_p10), %s1852_s27, 0 }
  0x6d   : > { %275 = sbr.rel (%p1863_p10) target bundleno = 1544 (0x608), region = 44  ;;  %s1065_s4 = sshll.u32 (!%p1863_p10), %s1686_s0, 2 }
  0x6e   : > { %s278_s12 = scalar_lea.sflag (!%p1863_p10), [#allocation3], %s1686_s0  ;;  %s281_s26 = scalar_lea.vmem (!%p1863_p10), [#allocation2], %s1065_s4 }
  0x72   : > { %1437 = dma.done.wait (%p1864_p0), %s278_s12, 64  }
  0x73   : > { %1439 = vsyncadd (%p1864_p0), %s278_s12, 4294967232  ;;  %s286_s16 = sand.u32 1, %s1551_s25   ;;  %s289_s11 = scalar_lea.vmem [#allocation5], %s1686_s0 }
  0x74   : > { %s287_s29 = scalar_lea.sflag [#allocation6], %s286_s16 }
  0x75   : > { %1441 = dma.done.wait (%p1864_p0), %s287_s29, 16  }
  0x76   : > { %1443 = vsyncadd (%p1864_p0), %s287_s29, 4294967280  ;;  %p1865_p8 = scmp.eq.s32.totalorder %s1551_s25, 0 }
  0x78   : > { %1445 = dma.done.wait (%p1865_p8), [#allocation6], 256   ;;  %p1866_p11 = pmov %p1865_p8 }
  0x79   : > { %p1867_p2 = pmov %p1865_p8 }
  0x7a   : > { %1447 = vsyncadd (%p1866_p11), [#allocation6], 4294967040 }
  0x7b   : > { %1449 = dma.done.wait (%p1867_p2), [#allocation9], 256   ;;  %p1868_p6 = pmov %p1867_p2 }
  0x7c   : > { %v1478_v0 = vmov 0.0   ;;  %vm1479_vm0 = vmmov 0   ;;  %v1266_v1 = vld [vmem:[#allocation7 + $0x8] sm:$0xff]   ;;  %v1267_v2 = vld [vmem:[#allocation7] sm:$0xff]   ;;  %v331_v3 = vld [vmem:[%s281_s26] sm:$0xf] }
  0x7d   : > { %1451 = vsyncadd (%p1868_p6), [#allocation9], 4294967040  ;;  %1112 = vmatprep.subr.bf16.mxu0 %v1478_v0  ;;  %1116 = vmatprep.mubr.msk.bf16.mxu0 %vm1479_vm0, %v1478_v0  ;;  %vm355_vm1 = vcmask 261120   ;;  %v1069_v4 = vld [vmem:[%s1841_s3] ss:$0 sm:$0xff]  ;;  %s1480_s17 = smov 120  }
  0x7e   : > { %1120 = vmatprep.subr.bf16.mxu1 %v1478_v0  ;;  %1122 = vmatprep.mubr.msk.bf16.mxu1 %vm1479_vm0, %v1478_v0  ;;  %s1481_s14 = smov 96   ;;  %s1482_s13 = smov 80   ;;  %vm410_vm2 = vcmask 64512   ;;  %v1073_v22 = vld [vmem:[%s289_s11] ss:$0 sm:$0xff]  ;;  %vm474_vm3 = vcmask 1043456  }
  0x7f   : > { %1113 = vmatpush3.bf16.msra.mxu0 %v1266_v1  ;;  %s1483_s15 = smov 88   ;;  %s1484_s8 = smov 72   ;;  %vm861_vm4 = vcmask 130048   ;;  %vm863_vm5 = vcmask 195584  }
  0x80   : > { %1114 = vmatprep.subr.bf16.mxu0 %v1478_v0  ;;  %s1485_s18 = smov 112   ;;  %s1486_s20 = smov 104  }
  0x81   : > { %s1487_s10 = smov 56   ;;  %s1488_s2 = smov 64  }
  0x82   : > { %s1489_s4 = smov 40   ;;  %s1490_s12 = smov 48  }
  0x83   : > { %1115 = vmatpush3.bf16.msra.mxu0 %v1267_v2  ;;  %s1491_s26 = smov 8   ;;  %s1492_s16 = smov 16  }
  0x84   : > { %1126 = vmatprep.subr.bf16.mxu0 %v1478_v0  ;;  %s1493_s29 = smov 24   ;;  %s1068_s11 = sshll.u32 %s1686_s0, 3 }
  0x85   : > { %p1869_p7 = scmp.ne.s32.totalorder %s1859_s30, 0 }
  0x86   : > { %1117 = vmatmul.mubr.msk.bf16.vlgmr.msra.gmra.mxu0 %vm355_vm1, %v331_v3 }
  0x87   : > { %1128 = vmatprep.mubr.msk.bf16.mxu0 %vm1479_vm0, %v1478_v0 }
 0x146   : > { %v393_v5 = vpop.f32.mrf.mxu0 }
 0x147   : > { %v394_v6 = vadd.f32 %v1069_v4, %v393_v5 }
 0x148   : > { %v1118_v7 = vpop.f32.mrf.mxu0 }
 0x149   : > { %v1722_v8 = vpack.c.bf16 %v394_v6, %v394_v6 }
 0x14a   : > { %v396_v9 = vpop.f32.mrf.mxu0 }
 0x14b   : > { %518 = vrot.lane.b32.xlu1 %v1722_v8, %s1480_s17  ;;  %408 = vrot.lane.b32.xlu0 %v1722_v8, %s1481_s14  ;;  %s1087_s17 = sshll.u32 %s1551_s25, 7  ;;  %s329_s14 = scalar_lea.vmem [#allocation10], %s1068_s11 }
 0x14c   : > { %v1119_v10 = vpop.f32.mrf.mxu0 }
 0x14f   : > { %630 = vrot.lane.b32.xlu1 %v1722_v8, %s1482_s13  ;;  %520 = vrot.lane.b32.xlu0 %v1722_v8, %s1483_s15  ;;  %s947_s13 = sshll.u32 %s329_s14, 4  ;;  %s1796_s13 = int_to_ptr.vmem [resolvable:$true] %s947_s13 }
 0x150   : > { %s1394_s25 = scalar_lea.vmem %s1796_s13, 128 }
 0x151   : > { %p1395_p12 = scmp.ne.s32.totalorder %s1796_s13, %s1394_s25 }
 0x153   : > { %740 = vrot.lane.b32.xlu1 %v1722_v8, %s1484_s8  ;;  %628 = vrot.lane.b32.xlu0 %v1722_v8, %s1485_s18  ;;  %s1794_s18 = scalar_lea.hbm %s1844_s6, %s1087_s17  ;;  %p1396_p9 = pnand %p1395_p12, %p1869_p7 }
 0x155   : > { %p1397_p13 = pneg %p1396_p9 }
 0x157   : > { %738 = vrot.lane.b32.xlu0 %v1722_v8, %s1486_s20  ;;  %s934_s20 = scalar_lea.sflag [#allocation4], %s1686_s0 }
 0x1bd   : > { %v409_v11 = vpop.permute.xlu0 %408  ;;  %v519_v14 = vpop.permute.xlu1 %518 }
 0x1be   : > { %v415_v12 = vsel %vm410_vm2, %v409_v11, 0 }
 0x1bf   : > { %1121 = vmatpush3.bf16.xpose.msra.mxu1 %v415_v12 }
 0x1c0   : > { %1132 = vmatprep.subr.bf16.mxu1 %v1478_v0 }
 0x1c1   : > { %v521_v13 = vpop.permute.xlu0 %520  ;;  %v631_v16 = vpop.permute.xlu1 %630 }
 0x1c2   : > { %v526_v15 = vsel %vm410_vm2, %v521_v13, 0  ;;  %v636_v17 = vsel %vm410_vm2, %v631_v16, 0 }
 0x1c5   : > { %v741_v18 = vpop.permute.xlu1 %740  ;;  %v629_v19 = vpop.permute.xlu0 %628 }
 0x1c6   : > { %1123 = vmatmul.mubr.msk.bf16.vlgmr.msra.gmra.mxu1 %vm410_vm2, %v1722_v8  ;;  %v746_v20 = vsel %vm410_vm2, %v741_v18, 0 }
 0x1c7   : > { %1133 = vmatpush3.bf16.xpose.msra.mxu1 %v526_v15  ;;  %1134 = vmatprep.mubr.msk.bf16.mxu1 %vm1479_vm0, %v1478_v0 }
 0x1c8   : > { %1144 = vmatprep.subr.bf16.mxu1 %v1478_v0 }
 0x1c9   : > { %v739_v21 = vpop.permute.xlu0 %738 }
 0x1ce   : > { %1135 = vmatmul.mubr.msk.bf16.vlgmr.msra.gmra.mxu1 %vm410_vm2, %v519_v14 }
 0x1cf   : > { %1145 = vmatpush3.bf16.xpose.msra.mxu1 %v636_v17  ;;  %1146 = vmatprep.mubr.msk.bf16.mxu1 %vm1479_vm0, %v1478_v0 }
 0x1d0   : > { %1156 = vmatprep.subr.bf16.mxu1 %v1478_v0 }
 0x1d6   : > { %1147 = vmatmul.mubr.msk.bf16.vlgmr.msra.gmra.mxu1 %vm410_vm2, %v629_v19 }
 0x1d7   : > { %1157 = vmatpush3.bf16.xpose.msra.mxu1 %v746_v20  ;;  %1158 = vmatprep.mubr.msk.bf16.mxu1 %vm1479_vm0, %v1478_v0 }
 0x1d8   : > { %1168 = vmatprep.subr.bf16.mxu1 %v1478_v0 }
 0x1de   : > { %1159 = vmatmul.mubr.msk.bf16.vlgmr.msra.gmra.mxu1 %vm410_vm2, %v739_v21 }
 0x1df   : > { %1172 = vmatprep.mubr.msk.bf16.mxu1 %vm1479_vm0, %v1478_v0 }
 0x286   : > { %v451_v23 = vpop.f32.mrf.mxu1 }
 0x287   : > { %v452_v24 = vadd.f32 %v1073_v22, %v451_v23 }
 0x288   : > { %v1124_v25 = vpop.f32.mrf.mxu1 }
 0x289   : > { %v457_v26 = vsel %vm410_vm2, %v452_v24, -inf }
 0x28a   : > { %458 = vmax.xlane.f32.xlu1 %v457_v26  ;;  %v454_v27 = vpop.f32.mrf.mxu1 }
 0x28c   : > { %v1125_v28 = vpop.f32.mrf.mxu1 }
 0x28e   : > { %v562_v29 = vpop.f32.mrf.mxu1 }
 0x28f   : > { %v563_v30 = vadd.f32 %v1073_v22, %v562_v29 }
 0x290   : > { %v1136_v31 = vpop.f32.mrf.mxu1 }
 0x291   : > { %v568_v32 = vsel %vm410_vm2, %v563_v30, -inf }
 0x292   : > { %569 = vmax.xlane.f32.xlu0 %v568_v32  ;;  %v565_v33 = vpop.f32.mrf.mxu1 }
 0x294   : > { %v1137_v34 = vpop.f32.mrf.mxu1 }
 0x296   : > { %v672_v35 = vpop.f32.mrf.mxu1 }
 0x297   : > { %v673_v36 = vadd.f32 %v1073_v22, %v672_v35 }
 0x298   : > { %v1148_v37 = vpop.f32.mrf.mxu1 }
 0x299   : > { %v678_v38 = vsel %vm410_vm2, %v673_v36, -inf  ;;  %v1269_v37 = vld [vmem:[#allocation8] sm:$0xff]  }
 0x29a   : > { %679 = vmax.xlane.f32.xlu0 %v678_v38  ;;  %v675_v39 = vpop.f32.mrf.mxu1 }
 0x29c   : > { %v1149_v40 = vpop.f32.mrf.mxu1 }
 0x29e   : > { %v782_v41 = vpop.f32.mrf.mxu1 }
 0x29f   : > { %v783_v42 = vadd.f32 %v1073_v22, %v782_v41 }
 0x2a0   : > { %v1160_v43 = vpop.f32.mrf.mxu1 }
 0x2a1   : > { %v788_v44 = vsel %vm410_vm2, %v783_v42, -inf }
 0x2a2   : > { %789 = vmax.xlane.f32.xlu1 %v788_v44  ;;  %v785_v45 = vpop.f32.mrf.mxu1 }
 0x2a4   : > { %v1161_v46 = vpop.f32.mrf.mxu1 }
 0x313   : > { %v459_v47 = vpop.xlane.xlu1 %458 }
 0x314   : > { %v460_v48 = vsub.f32 %v452_v24, %v459_v47 }
 0x316   : > { %v461_v49 = vmul.f32 1.442695, %v460_v48 }
 0x318   : > { %1270 = vpow2.f32 %v461_v49 }
 0x31b   : > { %v570_v50 = vpop.xlane.xlu0 %569 }
 0x31c   : > { %v571_v51 = vsub.f32 %v563_v30, %v570_v50 }
 0x31e   : > { %v572_v52 = vmul.f32 1.442695, %v571_v51 }
 0x320   : > { %1272 = vpow2.f32 %v572_v52  ;;  %v1082_v52 = vld [vmem:[%s1843_s5] ss:$0 sm:$0xff] }
 0x323   : > { %v680_v53 = vpop.xlane.xlu0 %679 }
 0x324   : > { %v681_v54 = vsub.f32 %v673_v36, %v680_v53  ;;  %v1268_v36 = vld [vmem:[#allocation8 + $0x8] sm:$0xff]  }
 0x325   : > { %v1271_v55 = vpop.eup %1270  ;;  %1169 = vmatpush3.bf16.msra.mxu1 %v1268_v36 }
 0x326   : > { %v682_v56 = vmul.f32 1.442695, %v681_v54  ;;  %v463_v57 = vsel %vm410_vm2, %v1271_v55, 0.0  ;;  %1170 = vmatprep.subr.bf16.mxu1 %v1478_v0 }
 0x327   : > { %464 = vadd.xlane.f32.xlu0 %v463_v57 }
 0x328   : > { %1274 = vpow2.f32 %v682_v56 }
 0x329   : > { %1171 = vmatpush3.bf16.msra.mxu1 %v1269_v37 }
 0x32b   : > { %v790_v62 = vpop.xlane.xlu1 %789 }
 0x32c   : > { %v791_v63 = vsub.f32 %v783_v42, %v790_v62 }
 0x32d   : > { %v1273_v58 = vpop.eup %1272 }
 0x32e   : > { %v574_v59 = vsel %vm410_vm2, %v1273_v58, 0.0  ;;  %v792_v1 = vmul.f32 1.442695, %v791_v63 }
 0x32f   : > { %575 = vadd.xlane.f32.xlu1 %v574_v59 }
 0x330   : > { %1276 = vpow2.f32 %v792_v1 }
 0x335   : > { %v1275_v60 = vpop.eup %1274 }
 0x336   : > { %v684_v61 = vsel %vm410_vm2, %v1275_v60, 0.0 }
 0x337   : > { %685 = vadd.xlane.f32.xlu0 %v684_v61 }
 0x33d   : > { %v1277_v2 = vpop.eup %1276 }
 0x33e   : > { %v794_v3 = vsel %vm410_vm2, %v1277_v2, 0.0 }
 0x340   : > { %580 = vrot.lane.b32.xlu1 %v1722_v8, %s1487_s10  ;;  %s1494_s10 = smov [#allocation10]  }
 0x34d   : > { %469 = vrot.lane.b32.xlu0 %v1722_v8, %s1488_s2  ;;  %s1398_s2 = sshll.u32 %s1494_s10, 4  ;;  %s1399_s2 = int_to_ptr.vmem [resolvable:$false] %s1398_s2 }
 0x34e   : > { %p1401_p5 = scmp.lt.s32.totalorder %s1796_s13, %s1399_s2 }
 0x351   : > { %800 = vrot.lane.b32.xlu0 %v1722_v8, %s1489_s4  ;;  %s1400_s4 = scalar_lea.vmem %s1399_s2, 256 }
 0x352   : > { %p1402_p1 = scmp.lt.s32.totalorder %s1400_s4, %s1394_s25 }
 0x354   : > { %p1403_p4 = por %p1402_p1, %p1401_p5 }
 0x356   : > { %p1404_p3 = pnand %p1403_p4, %p1397_p13 }
 0x364   : > { %795 = vadd.xlane.f32.xlu1 %v794_v3 }
 0x375   : > { %690 = vrot.lane.b32.xlu1 %v1722_v8, %s1490_s12 }
 0x3b0   : > { %v465_v4 = vpop.xlane.xlu0 %464 }
 0x3b1   : > { %1278 = vrcp.f32 %v465_v4 }
 0x3b8   : > { %v576_v5 = vpop.xlane.xlu1 %575 }
 0x3b9   : > { %1280 = vrcp.f32 %v576_v5 }
 0x3bc   : > { %v581_v12 = vpop.permute.xlu1 %580 }
 0x3bd   : > { %v586_v15 = vsel %vm474_vm3, %v581_v12, 0 }
 0x3be   : > { %v1279_v6 = vpop.eup %1278 }
 0x3bf   : > { %v467_v9 = vmul.f32 %v1279_v6, %v1271_v55 }
 0x3c0   : > { %v686_v7 = vpop.xlane.xlu0 %685 }
 0x3c1   : > { %v468_v13 = vpack.c.bf16 %v467_v9, %v467_v9  ;;  %1282 = vrcp.f32 %v686_v7 }
 0x3c4   : > { %v470_v10 = vpop.permute.xlu0 %469 }
 0x3c5   : > { %v476_v11 = vsel %vm474_vm3, %v470_v10, 0 }
 0x3c6   : > { %1127 = vmatpush3.bf16.msra.mxu0 %v476_v11  ;;  %v1281_v14 = vpop.eup %1280 }
 0x3c7   : > { %1138 = vmatprep.subr.bf16.mxu0 %v1478_v0  ;;  %v578_v8 = vmul.f32 %v1281_v14, %v1273_v58 }
 0x3c8   : > { %v801_v22 = vpop.permute.xlu0 %800 }
 0x3c9   : > { %1129 = vmatmul.mubr.msk.bf16.vlgmr.msra.gmra.mxu0 %vm410_vm2, %v468_v13  ;;  %v579_v16 = vpack.c.bf16 %v578_v8, %v578_v8  ;;  %v806_v24 = vsel %vm474_vm3, %v801_v22, 0 }
 0x3ca   : > { %1139 = vmatpush3.bf16.msra.mxu0 %v586_v15  ;;  %1140 = vmatprep.mubr.msk.bf16.mxu0 %vm1479_vm0, %v1478_v0 }
 0x3cb   : > { %1150 = vmatprep.subr.bf16.mxu0 %v1478_v0 }
 0x3ce   : > { %v1283_v17 = vpop.eup %1282 }
 0x3cf   : > { %v688_v19 = vmul.f32 %v1283_v17, %v1275_v60 }
 0x3d1   : > { %1141 = vmatmul.mubr.msk.bf16.vlgmr.msra.gmra.mxu0 %vm410_vm2, %v579_v16  ;;  %v689_v23 = vpack.c.bf16 %v688_v19, %v688_v19 }
 0x3d2   : > { %1152 = vmatprep.mubr.msk.bf16.mxu0 %vm1479_vm0, %v1478_v0 }
 0x3ed   : > { %v796_v18 = vpop.xlane.xlu1 %795 }
 0x3ee   : > { %1284 = vrcp.f32 %v796_v18 }
 0x3f1   : > { %v691_v20 = vpop.permute.xlu1 %690 }
 0x3f2   : > { %v696_v21 = vsel %vm474_vm3, %v691_v20, 0 }
 0x3f3   : > { %1151 = vmatpush3.bf16.msra.mxu0 %v696_v21 }
 0x3f4   : > { %1162 = vmatprep.subr.bf16.mxu0 %v1478_v0 }
 0x3f6   : > { %1153 = vmatmul.mubr.msk.bf16.vlgmr.msra.gmra.mxu0 %vm410_vm2, %v689_v23 }
 0x3f7   : > { %1163 = vmatpush3.bf16.msra.mxu0 %v806_v24  ;;  %1164 = vmatprep.mubr.msk.bf16.mxu0 %vm1479_vm0, %v1478_v0 }
 0x3fb   : > { %v1285_v25 = vpop.eup %1284 }
 0x3fc   : > { %v798_v26 = vmul.f32 %v1285_v25, %v1277_v2 }
 0x3fe   : > { %v799_v27 = vpack.c.bf16 %v798_v26, %v798_v26 }
 0x400   : > { %1165 = vmatmul.mubr.msk.bf16.vlgmr.msra.gmra.mxu0 %vm410_vm2, %v799_v27 }
 0x489   : > { %v512_v28 = vpop.f32.mrf.mxu0 }
 0x48b   : > { %v1130_v29 = vpop.f32.mrf.mxu0 }
 0x48d   : > { %v515_v30 = vpop.f32.mrf.mxu0 }
 0x48f   : > { %v1131_v31 = vpop.f32.mrf.mxu0 }
 0x491   : > { %v622_v32 = vpop.f32.mrf.mxu0 }
 0x492   : > { %849 = vrot.lane.b32.xlu1 %v622_v32, %s1491_s26 }
 0x493   : > { %v1142_v33 = vpop.f32.mrf.mxu0 }
 0x495   : > { %v625_v34 = vpop.f32.mrf.mxu0 }
 0x497   : > { %v1143_v35 = vpop.f32.mrf.mxu0 }
 0x4b6   : > { %v732_v38 = vpop.f32.mrf.mxu0 }
 0x4b7   : > { %853 = vrot.lane.b32.xlu0 %v732_v38, %s1492_s16 }
 0x4b8   : > { %v1154_v39 = vpop.f32.mrf.mxu0 }
 0x4ba   : > { %v735_v40 = vpop.f32.mrf.mxu0 }
 0x4bc   : > { %v1155_v41 = vpop.f32.mrf.mxu0 }
 0x4c0   : > { %v842_v42 = vpop.f32.mrf.mxu0 }
 0x4c1   : > { %857 = vrot.lane.b32.xlu1 %v842_v42, %s1493_s29 }
 0x4c2   : > { %v1166_v43 = vpop.f32.mrf.mxu0 }
 0x4c4   : > { %v845_v44 = vpop.f32.mrf.mxu0 }
 0x4c6   : > { %v1167_v45 = vpop.f32.mrf.mxu0 }
 0x504   : > { %v850_v46 = vpop.permute.xlu1 %849 }
 0x505   : > { %v860_v0 = vsel %vm410_vm2, %v512_v28, %v850_v46 }
 0x529   : > { %v854_v47 = vpop.permute.xlu0 %853 }
 0x52a   : > { %v862_v48 = vsel %vm861_vm4, %v860_v0, %v854_v47 }
 0x533   : > { %v858_v49 = vpop.permute.xlu1 %857 }
 0x534   : > { %v864_v50 = vsel %vm863_vm5, %v862_v48, %v858_v49 }
 0x535   : > { %v865_v51 = vpack.c.bf16 %v864_v50, %v864_v50 }
 0x537   : > { %1173 = vmatmul.mubr.msk.bf16.vlgmr.msra.gmra.mxu1 %vm355_vm1, %v865_v51 }
 0x5f7   : > { %v926_v53 = vpop.f32.mrf.mxu1 }
 0x5f8   : > { %v927_v54 = vadd.f32 %v1082_v52, %v926_v53 }
 0x5f9   : > { %v1174_v55 = vpop.f32.mrf.mxu1 }
 0x5fa   : > { %932 = vst.msk [vmem:[%s329_s14] sm:$0xff] %vm355_vm1, %v927_v54 }
 0x5fb   : > { %v929_v56 = vpop.f32.mrf.mxu1 }
 0x5fc   : > { %1407 = shalt.err (!%p1404_p3)
}
 0x5fd   : > { %s1408_s12 = scalar_lea.hbm %s1794_s18, 128  ;;  %s1412_s16 = scalar_lea.hbm %s1844_s6, 256 }
 0x5fe   : > { %p1409_p10 = scmp.ne.s32.totalorder %s1794_s18, %s1408_s12  ;;  %p1413_p11 = scmp.lt.s32.totalorder %s1794_s18, %s1844_s6 }
 0x5ff   : > { %p1414_p2 = scmp.lt.s32.totalorder %s1412_s16, %s1408_s12 }
 0x600   : > { %p1410_p0 = pnand %p1409_p10, %p1869_p7 }
 0x601   : > { %p1415_p6 = por %p1414_p2, %p1413_p11 }
 0x602   : > { %p1411_p8 = pneg %p1410_p0 }
 0x604   : > { %p1416_p12 = pnand %p1415_p6, %p1411_p8 }
 0x606   : > { %1419 = shalt.err (!%p1416_p12)
}
 0x607   : > { %1188 = dma.vmem_to_hbm [thread:$0]  (%p1869_p7), %s1796_s13, 128, %s1794_s18, %s934_s20   ;;  %v1175_v57 = vpop.f32.mrf.mxu1 }
 0x608 PF: > { %s959_s27 = sand.u32 1, %s1458_s21   ;;  %p1870_p9 = scmp.ne.s32.totalorder %s1853_s28, 0 }
 0x609   : > { %p1871_p13 = scmp.ge.s32.totalorder %s1470_s24, 2  ;;  %s960_s9 = scalar_lea.sflag [#allocation4], %s959_s27 }
 0x60b   : > { %p1205_p5 = pnand %p1871_p13, %p1870_p9 }
 0x60d   : > { %p1206_p1 = pneg %p1205_p5 }
 0x60f   : > { %1453 = dma.done.wait (%p1206_p1), %s960_s9, 128  }
 0x610   : > { %1455 = vsyncadd (%p1206_p1), %s960_s9, 4294967168  ;;  %p23_p4 = scmp.ge.s32.totalorder %s1602_s19, 4   ;;  %s1872_s21 = smov %s1462_s22 }
 0x611   : > { %s1873_s22 = smov %s1466_s23  ;;  %s1874_s23 = smov %s1618_s7 }
 0x612   : > { %s1875_s24 = smov %s1602_s19  ;;  %25 = sbr.rel (!%p23_p4) target bundleno = 12 (0xc), region = 110 }
 0x617   :  { %965 = vsyncpa [#allocation3], 1 }
 0x618   :  { %967 = vsyncpa [#allocation3 + $0x1], 1 }
 0x619   :  { %968 = vsyncpa [#allocation6], 1 }
 0x61a   :  { %970 = vsyncpa [#allocation6 + $0x1], 1 }
 0x61b   :  { %971 = vsyncpa [#allocation9], 1 }
 0x61c   :  { %972 = vsyncpa [#allocation4], 1 }
 0x61d   :  { %974 = vsyncpa [#allocation4 + $0x1], 1 }

</bundles_post_ra>
